<compile_context>
chip_gen: v7x
topology: tpu7x:2x2x1
jax: 0.10.0
libtpu: 0.0.40
codegen_flags: <defaults>
</compile_context>

<pallas_src>
import jax
import jax.numpy as jnp
import numpy as np
from jax.experimental import pallas as pl
from jax.experimental.pallas import tpu as pltpu


def _round_up(x, m):
    return (x + m - 1) // m * m


# ---------------------------------------------------------------------------
# phase 0: prompt linears (fused) + ReLU + membership select + concat
# ---------------------------------------------------------------------------
def _prompt_cat_kernel(feat_ref, mask_ref, wp_ref, bp_ref, cat_ref):
    d_in = feat_ref.shape[1]
    pdim = wp_ref.shape[1] // 2
    feat = feat_ref[...]
    # one matmul for both prompt heads:  feat @ [W_pin | W_pout]
    p = jnp.dot(feat, wp_ref[...], preferred_element_type=jnp.float32) + bp_ref[...]
    p = jnp.maximum(p, 0.0)
    sel = jnp.where(mask_ref[...] > 0.5, p[:, :pdim], p[:, pdim:])
    # cat = [feat | sel]
    cat_ref[:, :d_in] = feat
    cat_ref[:, d_in:] = sel


# ---------------------------------------------------------------------------
# phase 1: SAGE layer 0  (grid = (dst_tiles, src_tiles), src = reduction)
# ---------------------------------------------------------------------------
def _sage0_kernel(a_ref, cat_src_ref, cat_dst_ref, ws_ref, wn_ref, b_ref,
                  h0_ref, acc_ref):
    k = pl.program_id(1)

    @pl.when(k == 0)
    def _init():
        acc_ref[...] = jnp.zeros_like(acc_ref)

    # bf16 x bf16 -> f32 accumulate on the MXU (A streamed from HBM as bf16)
    acc_ref[...] += jnp.dot(a_ref[...], cat_src_ref[...].astype(jnp.bfloat16),
                            preferred_element_type=jnp.float32)

    @pl.when(k == pl.num_programs(1) - 1)
    def _finalize():
        h = (jnp.dot(cat_dst_ref[...], ws_ref[...], preferred_element_type=jnp.float32)
             + jnp.dot(acc_ref[...], wn_ref[...], preferred_element_type=jnp.float32)
             + b_ref[...])
        h0_ref[...] = jnp.maximum(h, 0.0)          # ReLU between GNN layers


# ---------------------------------------------------------------------------
# phase 2: SAGE layer 1 + classifier (no activation after last GNN layer)
# ---------------------------------------------------------------------------
def _sage1_cls_kernel(a_ref, h_src_ref, h_dst_ref, ws_ref, wn_ref, b_ref,
                      wc_ref, bc_ref, out_ref, acc_ref):
    k = pl.program_id(1)

    @pl.when(k == 0)
    def _init():
        acc_ref[...] = jnp.zeros_like(acc_ref)

    acc_ref[...] += jnp.dot(a_ref[...], h_src_ref[...].astype(jnp.bfloat16),
                            preferred_element_type=jnp.float32)

    @pl.when(k == pl.num_programs(1) - 1)
    def _finalize():
        h1 = (jnp.dot(h_dst_ref[...], ws_ref[...], preferred_element_type=jnp.float32)
              + jnp.dot(acc_ref[...], wn_ref[...], preferred_element_type=jnp.float32)
              + b_ref[...])
        out_ref[...] = (jnp.dot(h1, wc_ref[...], preferred_element_type=jnp.float32)
                        + bc_ref[...])


# ---------------------------------------------------------------------------
# wrapper
# ---------------------------------------------------------------------------
def gnn_with_prompt_forward(features, membership_mask, blocks, params,
                            output_nodes_indices=None, *, max_tile=512):
    """features: (N, D_in) f32; membership_mask: (N,) bool;
    blocks: (A0, A1) dense row-normalized mean-aggregation matrices (N, N).
    output_nodes_indices accepted but unused (matches the torch forward)."""
    del output_nodes_indices
    f32 = jnp.float32
    n, d_in = features.shape
    a0, a1 = blocks
    hidden = params["w_self1"].shape[0]
    prompt = params["w_pin"].shape[1]
    d_cat = d_in + prompt
    out_dim = params["w_cls"].shape[1]

    # single tile for dst & src keeps padding/divisibility trivial; it is a
    # multiple of 128 so both A block dims satisfy the (8, 128) constraint.
    tile = min(max_tile, _round_up(n, 128))
    n_pad = _round_up(n, tile)
    n_tiles = n_pad // tile
    out_pad = _round_up(out_dim, 128)              # lane-dense final stores

    # --- glue: pad nodes, cast A to bf16, fuse/pad small weights ------------
    feat_p = jnp.zeros((n_pad, d_in), f32).at[:n].set(features.astype(f32))
    mask_p = jnp.zeros((n_pad, 1), f32).at[:n, 0].set(membership_mask.astype(f32))
    a0_p = jnp.zeros((n_pad, n_pad), jnp.bfloat16).at[:n, :n].set(a0.astype(jnp.bfloat16))
    a1_p = jnp.zeros((n_pad, n_pad), jnp.bfloat16).at[:n, :n].set(a1.astype(jnp.bfloat16))

    w_pcat = jnp.concatenate([params["w_pin"], params["w_pout"]], axis=1)   # (D_in, 2P)
    b_pcat = jnp.concatenate([params["b_pin"], params["b_pout"]], axis=1)   # (1, 2P)
    w_cls_p = jnp.zeros((hidden, out_pad), f32).at[:, :out_dim].set(params["w_cls"])
    b_cls_p = jnp.zeros((1, out_pad), f32).at[:, :out_dim].set(params["b_cls"])

    cparams_1d = pltpu.CompilerParams(
        dimension_semantics=("parallel",),
        vmem_limit_bytes=32 * 1024 * 1024)
    cparams_2d = pltpu.CompilerParams(
        dimension_semantics=("parallel", "arbitrary"),   # dst parallel, src reduction
        vmem_limit_bytes=32 * 1024 * 1024)

    const2 = lambda i, k: (0, 0)   # weights/biases stay VMEM-resident (no re-DMA)

    # --- phase 0: prompted/concatenated features ----------------------------
    cat = pl.pallas_call(
        _prompt_cat_kernel,
        out_shape=jax.ShapeDtypeStruct((n_pad, d_cat), f32),
        grid=(n_tiles,),
        in_specs=[
            pl.BlockSpec((tile, d_in), lambda i: (i, 0)),
            pl.BlockSpec((tile, 1), lambda i: (i, 0)),
            pl.BlockSpec((d_in, 2 * prompt), lambda i: (0, 0)),
            pl.BlockSpec((1, 2 * prompt), lambda i: (0, 0)),
        ],
        out_specs=pl.BlockSpec((tile, d_cat), lambda i: (i, 0)),
        compiler_params=cparams_1d,
    )(feat_p, mask_p, w_pcat, b_pcat)

    # --- phase 1: SAGE layer 0 ----------------------------------------------
    h0 = pl.pallas_call(
        _sage0_kernel,
        out_shape=jax.ShapeDtypeStruct((n_pad, hidden), f32),
        grid=(n_tiles, n_tiles),
        in_specs=[
            pl.BlockSpec((tile, tile), lambda i, k: (i, k)),     # A0 tile (bf16)
            pl.BlockSpec((tile, d_cat), lambda i, k: (k, 0)),    # cat (src rows)
            pl.BlockSpec((tile, d_cat), lambda i, k: (i, 0)),    # cat (dst rows)
            pl.BlockSpec((d_cat, hidden), const2),               # W_self0
            pl.BlockSpec((d_cat, hidden), const2),               # W_neigh0
            pl.BlockSpec((1, hidden), const2),                   # b0
        ],
        out_specs=pl.BlockSpec((tile, hidden), lambda i, k: (i, 0)),
        scratch_shapes=[pltpu.VMEM((tile, d_cat), f32)],         # f32 accumulator
        compiler_params=cparams_2d,
    )(a0_p, cat, cat, params["w_self0"], params["w_neigh0"], params["b0"])

    # --- phase 2: SAGE layer 1 + classifier ---------------------------------
    logits_p = pl.pallas_call(
        _sage1_cls_kernel,
        out_shape=jax.ShapeDtypeStruct((n_pad, out_pad), f32),
        grid=(n_tiles, n_tiles),
        in_specs=[
            pl.BlockSpec((tile, tile), lambda i, k: (i, k)),     # A1 tile (bf16)
            pl.BlockSpec((tile, hidden), lambda i, k: (k, 0)),   # h0 (src rows)
            pl.BlockSpec((tile, hidden), lambda i, k: (i, 0)),   # h0 (dst rows)
            pl.BlockSpec((hidden, hidden), const2),              # W_self1
            pl.BlockSpec((hidden, hidden), const2),              # W_neigh1
            pl.BlockSpec((1, hidden), const2),                   # b1
            pl.BlockSpec((hidden, out_pad), const2),             # W_cls (padded)
            pl.BlockSpec((1, out_pad), const2),                  # b_cls (padded)
        ],
        out_specs=pl.BlockSpec((tile, out_pad), lambda i, k: (i, 0)),
        scratch_shapes=[pltpu.VMEM((tile, hidden), f32)],        # f32 accumulator
        compiler_params=cparams_2d,
    )(a1_p, h0, h0, params["w_self1"], params["w_neigh1"], params["b1"],
      w_cls_p, b_cls_p)

    return logits_p[:n, :out_dim]


# ---------------------------------------------------------------------------
# test harness
# ---------------------------------------------------------------------------
def _make_params(key, d_in, hidden, out_dim, prompt_dim):
    ks = jax.random.split(key, 12)

    def w(k, shape, scale=0.1):
        return (scale * jax.random.normal(k, shape)).astype(jnp.float32)

    d_cat = d_in + prompt_dim
    return {
        "w_pin":  w(ks[0], (d_in, prompt_dim)), "b_pin":  w(ks[1], (1, prompt_dim)),
        "w_pout": w(ks[2], (d_in, prompt_dim)), "b_pout": w(ks[3], (1, prompt_dim)),
        "w_self0":  w(ks[4], (d_cat, hidden)),
        "w_neigh0": w(ks[5], (d_cat, hidden)),
        "b0":       w(ks[6], (1, hidden)),
        "w_self1":  w(ks[7], (hidden, hidden)),
        "w_neigh1": w(ks[8], (hidden, hidden)),
        "b1":       w(ks[9], (1, hidden)),
        "w_cls": w(ks[10], (hidden, out_dim)),
        "b_cls": w(ks[11], (1, out_dim)),
    }


def _make_block(key, n):
    """Dense row-normalized mean-aggregation matrix for a random graph."""
    adj = jax.random.bernoulli(key, 0.4, (n, n)).astype(jnp.float32)
    adj = jnp.minimum(adj + jnp.eye(n, dtype=jnp.float32), 1.0)  # self-loop
    return adj / jnp.sum(adj, axis=1, keepdims=True)


def _reference(features, mask, blocks, params):
    p_in = jnp.maximum(features @ params["w_pin"] + params["b_pin"], 0.0)
    p_out = jnp.maximum(features @ params["w_pout"] + params["b_pout"], 0.0)
    sel = jnp.where(mask[:, None], p_in, p_out)
    h = jnp.concatenate([features, sel], axis=1)
    a0, a1 = blocks
    h0 = jnp.maximum(h @ params["w_self0"] + (a0 @ h) @ params["w_neigh0"] + params["b0"], 0.0)
    h1 = h0 @ params["w_self1"] + (a1 @ h0) @ params["w_neigh1"] + params["b1"]
    return h1 @ params["w_cls"] + params["b_cls"]


if __name__ == "__main__":
    # small but grid-exercising: N=300 with tile=128 -> pad to 384, 3x3 grid
    N, D_IN, HIDDEN, OUT_DIM, PROMPT = 300, 32, 32, 4, 8

    key = jax.random.PRNGKey(0)
    k_feat, k_mask, k_a0, k_a1, k_par = jax.random.split(key, 5)

    features = jax.random.normal(k_feat, (N, D_IN), dtype=jnp.float32)
    membership_mask = jax.random.bernoulli(k_mask, 0.5, (N,))
    blocks = (_make_block(k_a0, N), _make_block(k_a1, N))
    params = _make_params(k_par, D_IN, HIDDEN, OUT_DIM, PROMPT)
    output_nodes_indices = jnp.arange(N)  # unused by forward (matches torch code)

    logits = gnn_with_prompt_forward(features, membership_mask, blocks, params,
                                     output_nodes_indices, max_tile=128)
    jax.block_until_ready(logits)

    ref = _reference(features, membership_mask, blocks, params)
    # bf16 adjacency streaming -> ~1e-2 rel tolerance vs the pure-f32 reference
    np.testing.assert_allclose(np.asarray(logits), np.asarray(ref),
                               rtol=2e-2, atol=2e-2)
    print("KERNEL_OK")
</pallas_src>

<mosaic_0001>
module attributes {stable_mosaic.version = 11 : i64} {
  func.func @_prompt_cat_kernel(%arg0: i32, %arg1: memref<128x32xf32, #tpu.memory_space<vmem>>, %arg2: memref<128x1xf32, #tpu.memory_space<vmem>>, %arg3: memref<32x16xf32, #tpu.memory_space<vmem>>, %arg4: memref<1x16xf32, #tpu.memory_space<vmem>>, %arg5: memref<128x40xf32, #tpu.memory_space<vmem>>) attributes {dimension_semantics = [#tpu.dimension_semantics<parallel>], iteration_bounds = array<i64: 3>, scalar_prefetch = 0 : i64, scratch_operands = 0 : i64, tpu.core_type = #tpu.core_type<tc>, window_params = [{transform_indices = @transform_0, window_bounds = array<i64: 128, 32>}, {transform_indices = @transform_1, window_bounds = array<i64: 128, 1>}, {pipeline_mode = #tpu.pipeline_mode<synchronous>, transform_indices = @transform_2, window_bounds = array<i64: 32, 16>}, {pipeline_mode = #tpu.pipeline_mode<synchronous>, transform_indices = @transform_3, window_bounds = array<i64: 1, 16>}, {transform_indices = @transform_4, window_bounds = array<i64: 128, 40>}]} {
    %c0 = arith.constant 0 : index
    %c0_0 = arith.constant 0 : index
    %0 = vector.load %arg1[%c0, %c0_0] : memref<128x32xf32, #tpu.memory_space<vmem>>, vector<128x32xf32>
    %c0_1 = arith.constant 0 : index
    %c0_2 = arith.constant 0 : index
    %1 = vector.load %arg3[%c0_1, %c0_2] : memref<32x16xf32, #tpu.memory_space<vmem>>, vector<32x16xf32>
    %cst = arith.constant dense<0.000000e+00> : vector<128x16xf32>
    %2 = tpu.matmul %0, %1, %cst {dimension_numbers = #tpu.dot_dimension_numbers<[1], [0], [0], [1], [0, 0, 1, 1], [], []>} : vector<128x32xf32>, vector<32x16xf32>, vector<128x16xf32> -> vector<128x16xf32>
    %c0_3 = arith.constant 0 : index
    %c0_4 = arith.constant 0 : index
    %3 = vector.load %arg4[%c0_3, %c0_4] : memref<1x16xf32, #tpu.memory_space<vmem>>, vector<1x16xf32>
    %4 = vector.broadcast %3 : vector<1x16xf32> to vector<128x16xf32>
    %5 = arith.addf %2, %4 : vector<128x16xf32>
    %cst_5 = arith.constant 0.000000e+00 : f32
    %6 = vector.broadcast %cst_5 : f32 to vector<128x16xf32>
    %7 = arith.maximumf %5, %6 : vector<128x16xf32>
    %c0_6 = arith.constant 0 : index
    %c0_7 = arith.constant 0 : index
    %8 = vector.load %arg2[%c0_6, %c0_7] : memref<128x1xf32, #tpu.memory_space<vmem>>, vector<128x1xf32>
    %cst_8 = arith.constant 5.000000e-01 : f32
    %9 = vector.broadcast %cst_8 : f32 to vector<128x1xf32>
    %10 = arith.cmpf ogt, %8, %9 : vector<128x1xf32>
    %11 = vector.extract_strided_slice %7 {offsets = [0, 0], sizes = [128, 8], strides = [1, 1]} : vector<128x16xf32> to vector<128x8xf32>
    %12 = vector.extract_strided_slice %7 {offsets = [0, 8], sizes = [128, 8], strides = [1, 1]} : vector<128x16xf32> to vector<128x8xf32>
    %13 = vector.shape_cast %10 : vector<128x1xi1> to vector<128x1xi1>
    %14 = vector.broadcast %13 : vector<128x1xi1> to vector<128x8xi1>
    %15 = arith.select %14, %11, %12 : vector<128x8xi1>, vector<128x8xf32>
    %c0_9 = arith.constant 0 : index
    %c0_10 = arith.constant 0 : index
    %16 = vector.load %arg5[%c0_9, %c0_10] : memref<128x40xf32, #tpu.memory_space<vmem>>, vector<128x32xf32>
    tpu.vector_store %arg5[%c0_9, %c0_10], %0 {strides = array<i32>} : memref<128x40xf32, #tpu.memory_space<vmem>>, vector<128x32xf32>,
    %c0_11 = arith.constant 0 : index
    %c32 = arith.constant 32 : index
    %17 = vector.load %arg5[%c0_11, %c32] : memref<128x40xf32, #tpu.memory_space<vmem>>, vector<128x8xf32>
    tpu.vector_store %arg5[%c0_11, %c32], %15 {strides = array<i32>} : memref<128x40xf32, #tpu.memory_space<vmem>>, vector<128x8xf32>,
    return
  }
  func.func @transform_0(%arg0: i32) -> (i32, i32) {
    %c0_i32 = arith.constant 0 : i32
    %c0_i32_0 = arith.constant 0 : i32
    return %arg0, %c0_i32 : i32, i32
  }
  func.func @transform_1(%arg0: i32) -> (i32, i32) {
    %c0_i32 = arith.constant 0 : i32
    %c0_i32_0 = arith.constant 0 : i32
    return %arg0, %c0_i32 : i32, i32
  }
  func.func @transform_2(%arg0: i32) -> (i32, i32) {
    %c0_i32 = arith.constant 0 : i32
    %c0_i32_0 = arith.constant 0 : i32
    %c0_i32_1 = arith.constant 0 : i32
    return %c0_i32, %c0_i32_0 : i32, i32
  }
  func.func @transform_3(%arg0: i32) -> (i32, i32) {
    %c0_i32 = arith.constant 0 : i32
    %c0_i32_0 = arith.constant 0 : i32
    %c0_i32_1 = arith.constant 0 : i32
    return %c0_i32, %c0_i32_0 : i32, i32
  }
  func.func @transform_4(%arg0: i32) -> (i32, i32) {
    %c0_i32 = arith.constant 0 : i32
    %c0_i32_0 = arith.constant 0 : i32
    return %arg0, %c0_i32 : i32, i32
  }
}

</mosaic_0001>

<bundles_post_ra>
// kernel: tpu_custom_call.1
= control target key start
LH: loop header
LB: loop body
LE: loop exit
PB: predicated region body
PF: predicated region fallthrough
CT: control target
= control target key end

     0   :  { %s960_s15 = smov 0   ;;  %s1287_s0 = inlined_call_operand.vmem [shape: f32[384,32], index: 0, kind: input, shape index: {}]   ;;  %s1288_s1 = inlined_call_operand.vmem [shape: f32[384,1], index: 1, kind: input, shape index: {}]   ;;  %s1289_s2 = inlined_call_operand.vmem [shape: f32[32,16], index: 2, kind: input, shape index: {}]   ;;  %s1290_s3 = inlined_call_operand.vmem [shape: f32[1,16], index: 3, kind: input, shape index: {}]   ;;  %s1291_s4 = inlined_call_operand.vmem [shape: f32[384,40], index: 4, kind: output, shape index: {}]  }
   0x1 LB: > { %s817_s16 = sadd.s32 4294967295, %s930_s15   ;;  %p821_p0 = scmp.ge.s32.totalorder %s930_s15, 1  ;;  %s930_s15 = sphi %s960_s15, %s14_s15  }
   0x2   : > { %p174_p1 = scmp.lt.s32.totalorder %s930_s15, 4 }
   0x4   : > { %p175_p2 = pnand %p821_p0, %p174_p1 }
   0x5   : > { %v239_v0 = vld [vmem:[%s1289_s2] sm:$0xff] (!%p175_p2)  ;;  %v240_v1 = vld [vmem:[%s1289_s2 + $0x8] sm:$0xff] (!%p175_p2)  ;;  %v241_v2 = vld [vmem:[%s1289_s2 + $0x10] sm:$0xff] (!%p175_p2)  ;;  %s822_s23 = sshll.u32 (!%p175_p2), %s817_s16, 4  ;;  %v932_v5 = vmov (!%p175_p2), 0   ;;  %vm250_vm0 = vcmask (!%p175_p2), 261120  }
   0x6   : > { %178 = sbr.rel (%p175_p2) target bundleno = 495 (0x1ef), region = 36  ;;  %v899_v3 = vpack.c.bf16 (!%p175_p2), %v240_v1, %v239_v0  ;;  %v242_v4 = vld [vmem:[%s1289_s2 + $0x18] sm:$0xff] (!%p175_p2)  ;;  %p206_p3 = scmp.lt.s32.totalorder (!%p175_p2), %s822_s23, 47  ;;  %923 = vset.pattern.permute.xlu1 (!%p175_p2), %v932_v5  ;;  %922 = vset.pattern.permute.xlu0 (!%p175_p2), %v932_v5  ;;  %v828_v55 = vld [vmem:[%s1290_s3] ss:$0 sm:$0xff] (!%p175_p2) }
   0x7   : > { %v903_v6 = vpack.c.bf16 (!%p175_p2), %v242_v4, %v241_v2  ;;  %s933_s12 = smov (!%p175_p2), 120   ;;  %s934_s13 = smov (!%p175_p2), 32  }
   0x8   : > { %900 = vmatprep.subr.bf16.mxu0 (!%p175_p2), %v899_v3  ;;  %907 = vmatprep.subr.bf16.mxu1 (!%p175_p2), %v899_v3 }
   0x9   : > { %902 = vmatpush3.bf16.msra.mxu0 (!%p175_p2), %v899_v3  ;;  %909 = vmatpush3.bf16.msra.mxu1 (!%p175_p2), %v899_v3 }
   0xa   : > { %904 = vmatprep.subr.bf16.mxu0 (!%p175_p2), %v903_v6  ;;  %908 = vmatprep.subr.bf16.mxu1 (!%p175_p2), %v903_v6 }
   0xd   : > { %s1293_s23 = smov (!%p206_p3, %s822_s23), 47  ;;  %906 = vmatpush3.bf16.msra.mxu0 %v903_v6  ;;  %910 = vmatpush3.bf16.msra.mxu1 %v903_v6 }
   0xe   : > { %s823_s26 = sshll.u32 %s1293_s23, 3 }
   0xf   : > { %s985_s29 = scalar_lea.vmem %s1287_s0, %s823_s26  ;;  %s990_s6 = scalar_lea.vmem %s1291_s4, %s823_s26 }
  0x10   : > { %v223_v7 = vld [vmem:[%s985_s29] sm:$0xff]  ;;  %v224_v8 = vld [vmem:[%s985_s29 + $0x8] sm:$0xff]  ;;  %v225_v11 = vld [vmem:[%s985_s29 + $0x10] sm:$0xff]  ;;  %s1018_s9 = scalar_lea.vmem %s1288_s1, %s823_s26 }
  0x11   : > { %v231_v9 = vld [vmem:[%s985_s29 + $0x40] sm:$0xff]  ;;  %875 = vmatprep.mubr.msk.f32.mxu0 %vm250_vm0, %v223_v7  ;;  %652 = vst.msk [vmem:[%s990_s6] sm:$0xff] %vm250_vm0, %v223_v7  ;;  %653 = vst.msk [vmem:[%s990_s6 + $0x8] sm:$0xff] %vm250_vm0, %v224_v8  ;;  %v232_v10 = vld [vmem:[%s985_s29 + $0x48] sm:$0xff] }
  0x12   : > { %660 = vst.msk [vmem:[%s990_s6 + $0x40] sm:$0xff] %vm250_vm0, %v231_v9  ;;  %v226_v12 = vld [vmem:[%s985_s29 + $0x18] sm:$0xff]  ;;  %887 = vmatprep.mubr.msk.f32.mxu1 %vm250_vm0, %v231_v9  ;;  %661 = vst.msk [vmem:[%s990_s6 + $0x48] sm:$0xff] %vm250_vm0, %v232_v10  ;;  %v233_v13 = vld [vmem:[%s985_s29 + $0x50] sm:$0xff]  ;;  %876 = vmatmul.mubr.msk.f32.vlgmr.msra.gmra.mrb[0].mxu0 %vm250_vm0, %v224_v8 }
  0x13   : > { %654 = vst.msk [vmem:[%s990_s6 + $0x10] sm:$0xff] %vm250_vm0, %v225_v11  ;;  %655 = vst.msk [vmem:[%s990_s6 + $0x18] sm:$0xff] %vm250_vm0, %v226_v12  ;;  %v234_v14 = vld [vmem:[%s985_s29 + $0x58] sm:$0xff]  ;;  %v227_v15 = vld [vmem:[%s985_s29 + $0x20] sm:$0xff]  ;;  %888 = vmatmul.mubr.msk.f32.vlgmr.msra.gmra.mrb[0].mxu1 %vm250_vm0, %v232_v10  ;;  %878 = vmatprep.mubr.msk.f32.mxu0 %vm250_vm0, %v225_v11 }
  0x14   : > { %662 = vst.msk [vmem:[%s990_s6 + $0x50] sm:$0xff] %vm250_vm0, %v233_v13  ;;  %663 = vst.msk [vmem:[%s990_s6 + $0x58] sm:$0xff] %vm250_vm0, %v234_v14  ;;  %v228_v16 = vld [vmem:[%s985_s29 + $0x28] sm:$0xff]  ;;  %v235_v17 = vld [vmem:[%s985_s29 + $0x60] sm:$0xff]  ;;  %890 = vmatprep.mubr.msk.f32.mxu1 %vm250_vm0, %v233_v13 }
  0x15   : > { %656 = vst.msk [vmem:[%s990_s6 + $0x20] sm:$0xff] %vm250_vm0, %v227_v15  ;;  %v236_v18 = vld [vmem:[%s985_s29 + $0x68] sm:$0xff]  ;;  %657 = vst.msk [vmem:[%s990_s6 + $0x28] sm:$0xff] %vm250_vm0, %v228_v16  ;;  %v229_v19 = vld [vmem:[%s985_s29 + $0x30] sm:$0xff] }
  0x16   : > { %664 = vst.msk [vmem:[%s990_s6 + $0x60] sm:$0xff] %vm250_vm0, %v235_v17  ;;  %665 = vst.msk [vmem:[%s990_s6 + $0x68] sm:$0xff] %vm250_vm0, %v236_v18  ;;  %v230_v20 = vld [vmem:[%s985_s29 + $0x38] sm:$0xff]  ;;  %v237_v21 = vld [vmem:[%s985_s29 + $0x70] sm:$0xff]  ;;  %879 = vmatmul.mubr.msk.f32.gmra.mrb[2].mxu0 %vm250_vm0, %v226_v12 }
  0x17   : > { %658 = vst.msk [vmem:[%s990_s6 + $0x30] sm:$0xff] %vm250_vm0, %v229_v19  ;;  %659 = vst.msk [vmem:[%s990_s6 + $0x38] sm:$0xff] %vm250_vm0, %v230_v20  ;;  %v238_v22 = vld [vmem:[%s985_s29 + $0x78] sm:$0xff]  ;;  %v462_v23 = vld [vmem:[%s1018_s9 + $0x10] sm:$0xff]  ;;  %891 = vmatmul.mubr.msk.f32.gmra.mrb[2].mxu1 %vm250_vm0, %v234_v14  ;;  %881 = vmatprep.mubr.msk.f32.mxu0 %vm250_vm0, %v227_v15 }
  0x18   : > { %666 = vst.msk [vmem:[%s990_s6 + $0x70] sm:$0xff] %vm250_vm0, %v237_v21  ;;  %v460_v24 = vld [vmem:[%s1018_s9] sm:$0xff]  ;;  %667 = vst.msk [vmem:[%s990_s6 + $0x78] sm:$0xff] %vm250_vm0, %v238_v22  ;;  %vm478_vm1 = vcmp.gt.f32.partialorder %v462_v23, 0.5  ;;  %v463_v25 = vld [vmem:[%s1018_s9 + $0x18] sm:$0xff]  ;;  %893 = vmatprep.mubr.msk.f32.mxu1 %vm250_vm0, %v235_v17 }
  0x19   : > { %vm476_vm2 = vcmp.gt.f32.partialorder %v460_v24, 0.5  ;;  %v461_v26 = vld [vmem:[%s1018_s9 + $0x8] sm:$0xff]  ;;  %v494_v27 = vsel %vm478_vm1, 1, %v932_v5  ;;  %vm479_vm3 = vcmp.gt.f32.partialorder %v463_v25, 0.5  ;;  %v464_v31 = vld [vmem:[%s1018_s9 + $0x20] sm:$0xff]  ;;  %v467_v33 = vld [vmem:[%s1018_s9 + $0x38] sm:$0xff] }
  0x1a   : > { %v492_v28 = vsel %vm476_vm2, 1, %v932_v5  ;;  %v465_v29 = vld [vmem:[%s1018_s9 + $0x28] sm:$0xff]  ;;  %515 = vperm.xlu1 %923, %v494_v27   ;;  %vm477_vm4 = vcmp.gt.f32.partialorder %v461_v26, 0.5  ;;  %v495_v30 = vsel %vm479_vm3, 1, %v932_v5  ;;  %882 = vmatmul.mubr.msk.f32.gmra.mrb[4].mxu0 %vm250_vm0, %v228_v16  ;;  %vm480_vm6 = vcmp.gt.f32.partialorder %v464_v31, 0.5  ;;  %v466_v35 = vld [vmem:[%s1018_s9 + $0x30] sm:$0xff] }
  0x1b   : > { %509 = vperm.xlu0 %922, %v492_v28   ;;  %vm481_vm5 = vcmp.gt.f32.partialorder %v465_v29, 0.5  ;;  %v493_v32 = vsel %vm477_vm4, 1, %v932_v5  ;;  %894 = vmatmul.mubr.msk.f32.gmra.mrb[4].mxu1 %vm250_vm0, %v236_v18  ;;  %vm483_vm7 = vcmp.gt.f32.partialorder %v467_v33, 0.5  ;;  %v496_v36 = vsel %vm480_vm6, 1, %v932_v5  ;;  %v469_v37 = vld [vmem:[%s1018_s9 + $0x48] sm:$0xff]  ;;  %v468_v39 = vld [vmem:[%s1018_s9 + $0x40] sm:$0xff] }
  0x1c   : > { %884 = vmatprep.mubr.msk.f32.mxu0 %vm250_vm0, %v229_v19  ;;  %v497_v34 = vsel %vm481_vm5, 1, %v932_v5  ;;  %896 = vmatprep.mubr.msk.f32.mxu1 %vm250_vm0, %v237_v21  ;;  %vm482_vm8 = vcmp.gt.f32.partialorder %v466_v35, 0.5  ;;  %v499_v38 = vsel %vm483_vm7, 1, %v932_v5  ;;  %vm485_vm9 = vcmp.gt.f32.partialorder %v469_v37, 0.5  ;;  %v471_v41 = vld [vmem:[%s1018_s9 + $0x58] sm:$0xff]  ;;  %v470_v43 = vld [vmem:[%s1018_s9 + $0x50] sm:$0xff] }
  0x1d   : > { %v498_v40 = vsel %vm482_vm8, 1, %v932_v5  ;;  %vm484_vm10 = vcmp.gt.f32.partialorder %v468_v39, 0.5  ;;  %v501_v42 = vsel %vm485_vm9, 1, %v932_v5  ;;  %vm487_vm11 = vcmp.gt.f32.partialorder %v471_v41, 0.5  ;;  %v473_v45 = vld [vmem:[%s1018_s9 + $0x68] sm:$0xff]  ;;  %v472_v47 = vld [vmem:[%s1018_s9 + $0x60] sm:$0xff] }
  0x1e   : > { %518 = vperm.xlu1 %923, %v495_v30   ;;  %885 = vmatmul.mubr.msk.f32.gmra.mrb[6].mxu0 %vm250_vm0, %v230_v20  ;;  %v500_v44 = vsel %vm484_vm10, 1, %v932_v5  ;;  %vm486_vm12 = vcmp.gt.f32.partialorder %v470_v43, 0.5  ;;  %v503_v46 = vsel %vm487_vm11, 1, %v932_v5  ;;  %vm489_vm13 = vcmp.gt.f32.partialorder %v473_v45, 0.5  ;;  %v475_v49 = vld [vmem:[%s1018_s9 + $0x78] sm:$0xff]  ;;  %v474_v51 = vld [vmem:[%s1018_s9 + $0x70] sm:$0xff] }
  0x1f   : > { %512 = vperm.xlu0 %922, %v493_v32   ;;  %897 = vmatmul.mubr.msk.f32.gmra.mrb[6].mxu1 %vm250_vm0, %v238_v22  ;;  %v502_v48 = vsel %vm486_vm12, 1, %v932_v5  ;;  %vm488_vm14 = vcmp.gt.f32.partialorder %v472_v47, 0.5  ;;  %v505_v50 = vsel %vm489_vm13, 1, %v932_v5  ;;  %vm491_vm15 = vcmp.gt.f32.partialorder %v475_v49, 0.5 }
  0x20   : > { %v504_v52 = vsel %vm488_vm14, 1, %v932_v5  ;;  %vm490_vm0 = vcmp.gt.f32.partialorder %v474_v51, 0.5  ;;  %v507_v53 = vsel %vm491_vm15, 1, %v932_v5 }
  0x21   : > { %v506_v54 = vsel %vm490_vm0, 1, %v932_v5 }
  0x22   : > { %524 = vperm.xlu1 %923, %v497_v34  }
  0x23   : > { %521 = vperm.xlu0 %922, %v496_v36  }
  0x26   : > { %530 = vperm.xlu1 %923, %v499_v38  }
  0x27   : > { %527 = vperm.xlu0 %922, %v498_v40  }
  0x2a   : > { %536 = vperm.xlu1 %923, %v501_v42  }
  0x2b   : > { %533 = vperm.xlu0 %922, %v500_v44  }
  0x2e   : > { %542 = vperm.xlu1 %923, %v503_v46  }
  0x2f   : > { %539 = vperm.xlu0 %922, %v502_v48  }
  0x32   : > { %548 = vperm.xlu1 %923, %v505_v50  }
  0x33   : > { %545 = vperm.xlu0 %922, %v504_v52  }
  0x36   : > { %554 = vperm.xlu1 %923, %v507_v53  }
  0x37   : > { %551 = vperm.xlu0 %922, %v506_v54  }
  0x99   : > { %v516_v40 = vpop.permute.xlu1 %515 }
  0x9a   : > { %v510_v41 = vpop.permute.xlu0 %509  ;;  %vm558_vm6 = vcmp.eq.s32.totalorder %v516_v40, 1 }
  0x9b   : > { %vm556_vm2 = vcmp.eq.s32.totalorder %v510_v41, 1 }
  0x9d   : > { %v519_v42 = vpop.permute.xlu1 %518 }
  0x9e   : > { %v513_v43 = vpop.permute.xlu0 %512  ;;  %vm559_vm5 = vcmp.eq.s32.totalorder %v519_v42, 1 }
  0x9f   : > { %vm557_vm1 = vcmp.eq.s32.totalorder %v513_v43, 1 }
  0xa1   : > { %v525_v44 = vpop.permute.xlu1 %524 }
  0xa2   : > { %v522_v45 = vpop.permute.xlu0 %521  ;;  %vm561_vm9 = vcmp.eq.s32.totalorder %v525_v44, 1 }
  0xa3   : > { %vm560_vm10 = vcmp.eq.s32.totalorder %v522_v45, 1 }
  0xa5   : > { %v1192_v46 = vpop.permute.xlu1 %530 }
  0xa6   : > { %v1194_v47 = vpop.permute.xlu0 %527  ;;  %vm563_vm13 = vcmp.eq.s32.totalorder %v1192_v46, 1 }
  0xa7   : > { %vm562_vm14 = vcmp.eq.s32.totalorder %v1194_v47, 1 }
  0xa9   : > { %v537_v48 = vpop.permute.xlu1 %536 }
  0xaa   : > { %v534_v49 = vpop.permute.xlu0 %533  ;;  %vm565_vm3 = vcmp.eq.s32.totalorder %v537_v48, 1 }
  0xab   : > { %vm564_vm4 = vcmp.eq.s32.totalorder %v534_v49, 1 }
  0xad   : > { %v543_v50 = vpop.permute.xlu1 %542 }
  0xae   : > { %v540_v51 = vpop.permute.xlu0 %539  ;;  %vm567_vm7 = vcmp.eq.s32.totalorder %v543_v50, 1 }
  0xaf   : > { %vm566_vm8 = vcmp.eq.s32.totalorder %v540_v51, 1 }
  0xb1   : > { %v549_v52 = vpop.permute.xlu1 %548 }
  0xb2   : > { %v546_v53 = vpop.permute.xlu0 %545  ;;  %vm569_vm11 = vcmp.eq.s32.totalorder %v549_v52, 1 }
  0xb3   : > { %vm568_vm12 = vcmp.eq.s32.totalorder %v546_v53, 1 }
  0xb5   : > { %v1196_v54 = vpop.permute.xlu1 %554 }
  0xb6   : > { %vm571_vm15 = vcmp.eq.s32.totalorder %v1196_v54, 1 }
  0xe5   : > { %v877_v56 = vpop.f32.mrb[0].mxu0 }
  0xe6   : > { %v1096_v57 = vadd.f32 %v877_v56, %v828_v55  ;;  %v365_v58 = vpop.f32.mrb[1].mxu0  ;;  %v889_v59 = vpop.f32.mrb[0].mxu1 }
  0xe7   : > { %v1098_v60 = vadd.f32 %v828_v55, %v365_v58  ;;  %v1100_v61 = vadd.f32 %v889_v59, %v828_v55  ;;  %v405_v62 = vpop.f32.mrb[1].mxu1 }
  0xe8   : > { %v445_v63 = vmax.f32 %v1096_v57, 0.0  ;;  %v1103_v0 = vadd.f32 %v828_v55, %v405_v62 }
  0xe9   : > { %v444_v1 = vmax.f32 %v1098_v60, 0.0  ;;  %v880_v2 = vpop.f32.mrb[2].mxu0  ;;  %v453_v3 = vmax.f32 %v1100_v61, 0.0 }
  0xea   : > { %590 = vrot.lane.b32.xlu1 %v445_v63, %s933_s12  ;;  %v1110_v4 = vadd.f32 %v880_v2, %v828_v55  ;;  %v375_v5 = vpop.f32.mrb[3].mxu0  ;;  %v892_v6 = vpop.f32.mrb[2].mxu1  ;;  %v452_v7 = vmax.f32 %v1103_v0, 0.0 }
  0xeb   : > { %588 = vrot.lane.b32.xlu0 %v444_v1, %s933_s12  ;;  %v1116_v8 = vadd.f32 %v828_v55, %v375_v5  ;;  %v415_v9 = vpop.f32.mrb[3].mxu1  ;;  %v1122_v12 = vadd.f32 %v892_v6, %v828_v55 }
  0xec   : > { %v447_v11 = vmax.f32 %v1110_v4, 0.0  ;;  %v1128_v16 = vadd.f32 %v828_v55, %v415_v9 }
  0xed   : > { %v883_v10 = vpop.f32.mrb[4].mxu0  ;;  %v446_v15 = vmax.f32 %v1116_v8, 0.0  ;;  %v455_v19 = vmax.f32 %v1122_v12, 0.0 }
  0xee   : > { %606 = vrot.lane.b32.xlu1 %v453_v3, %s933_s12  ;;  %v385_v13 = vpop.f32.mrb[5].mxu0  ;;  %v895_v14 = vpop.f32.mrb[4].mxu1  ;;  %v1134_v20 = vadd.f32 %v883_v10, %v828_v55  ;;  %v454_v23 = vmax.f32 %v1128_v16, 0.0 }
  0xef   : > { %604 = vrot.lane.b32.xlu0 %v452_v7, %s933_s12  ;;  %v425_v17 = vpop.f32.mrb[5].mxu1  ;;  %v1140_v24 = vadd.f32 %v828_v55, %v385_v13  ;;  %v1146_v27 = vadd.f32 %v895_v14, %v828_v55 }
  0xf0   : > { %v449_v26 = vmax.f32 %v1134_v20, 0.0  ;;  %v1152_v29 = vadd.f32 %v828_v55, %v425_v17 }
  0xf1   : > { %v886_v18 = vpop.f32.mrb[6].mxu0  ;;  %v448_v28 = vmax.f32 %v1140_v24, 0.0  ;;  %v457_v30 = vmax.f32 %v1146_v27, 0.0 }
  0xf2   : > { %594 = vrot.lane.b32.xlu1 %v447_v11, %s933_s12  ;;  %v395_v21 = vpop.f32.mrb[7].mxu0  ;;  %v898_v22 = vpop.f32.mrb[6].mxu1  ;;  %v1158_v31 = vadd.f32 %v886_v18, %v828_v55  ;;  %v456_v32 = vmax.f32 %v1152_v29, 0.0 }
  0xf3   : > { %592 = vrot.lane.b32.xlu0 %v446_v15, %s933_s12  ;;  %v435_v25 = vpop.f32.mrb[7].mxu1  ;;  %v1164_v33 = vadd.f32 %v828_v55, %v395_v21  ;;  %v1170_v35 = vadd.f32 %v898_v22, %v828_v55 }
  0xf4   : > { %v451_v34 = vmax.f32 %v1158_v31, 0.0  ;;  %v1176_v37 = vadd.f32 %v828_v55, %v435_v25  ;;  %v1198_v55 = vpop.permute.xlu0 %551 }
  0xf5   : > { %v450_v36 = vmax.f32 %v1164_v33, 0.0  ;;  %v459_v38 = vmax.f32 %v1170_v35, 0.0  ;;  %vm570_vm0 = vcmp.eq.s32.totalorder %v1198_v55, 1 }
  0xf6   : > { %610 = vrot.lane.b32.xlu1 %v455_v19, %s933_s12  ;;  %v458_v39 = vmax.f32 %v1176_v37, 0.0 }
  0xf7   : > { %608 = vrot.lane.b32.xlu0 %v454_v23, %s933_s12 }
  0xfa   : > { %598 = vrot.lane.b32.xlu1 %v449_v26, %s933_s12 }
  0xfb   : > { %596 = vrot.lane.b32.xlu0 %v448_v28, %s933_s12 }
  0xfe   : > { %614 = vrot.lane.b32.xlu1 %v457_v30, %s933_s12 }
  0xff   : > { %612 = vrot.lane.b32.xlu0 %v456_v32, %s933_s12 }
 0x102   : > { %602 = vrot.lane.b32.xlu1 %v451_v34, %s933_s12 }
 0x103   : > { %600 = vrot.lane.b32.xlu0 %v450_v36, %s933_s12 }
 0x106   : > { %618 = vrot.lane.b32.xlu1 %v459_v38, %s933_s12 }
 0x107   : > { %616 = vrot.lane.b32.xlu0 %v458_v39, %s933_s12 }
 0x15c   : > { %v591_v56 = vpop.permute.xlu1 %590 }
 0x15d   : > { %v589_v58 = vpop.permute.xlu0 %588  ;;  %v637_v59 = vsel %vm557_vm1, %v445_v63, %v591_v56  ;;  %vm732_vm1 = vcmask 326912  }
 0x15e   : > { %686 = vrot.lane.b32.xlu1 %v637_v59, %s934_s13  ;;  %v636_v62 = vsel %vm556_vm2, %v444_v1, %v589_v58 }
 0x15f   : > { %684 = vrot.lane.b32.xlu0 %v636_v62, %s934_s13 }
 0x160   : > { %v607_v2 = vpop.permute.xlu1 %606 }
 0x161   : > { %v605_v5 = vpop.permute.xlu0 %604  ;;  %v645_v6 = vsel %vm565_vm3, %v453_v3, %v607_v2 }
 0x162   : > { %702 = vrot.lane.b32.xlu1 %v645_v6, %s934_s13  ;;  %v644_v57 = vsel %vm564_vm4, %v452_v7, %v605_v5 }
 0x163   : > { %700 = vrot.lane.b32.xlu0 %v644_v57, %s934_s13 }
 0x164   : > { %v595_v63 = vpop.permute.xlu1 %594 }
 0x165   : > { %v593_v60 = vpop.permute.xlu0 %592  ;;  %v639_v1 = vsel %vm559_vm5, %v447_v11, %v595_v63 }
 0x166   : > { %690 = vrot.lane.b32.xlu1 %v639_v1, %s934_s13  ;;  %v638_v61 = vsel %vm558_vm6, %v446_v15, %v593_v60 }
 0x167   : > { %688 = vrot.lane.b32.xlu0 %v638_v61, %s934_s13 }
 0x168   : > { %v611_v3 = vpop.permute.xlu1 %610 }
 0x169   : > { %v609_v0 = vpop.permute.xlu0 %608  ;;  %v647_v7 = vsel %vm567_vm7, %v455_v19, %v611_v3 }
 0x16a   : > { %706 = vrot.lane.b32.xlu1 %v647_v7, %s934_s13  ;;  %v646_v4 = vsel %vm566_vm8, %v454_v23, %v609_v0 }
 0x16b   : > { %704 = vrot.lane.b32.xlu0 %v646_v4, %s934_s13 }
 0x16c   : > { %v599_v9 = vpop.permute.xlu1 %598 }
 0x16d   : > { %v597_v8 = vpop.permute.xlu0 %596  ;;  %v641_v10 = vsel %vm561_vm9, %v449_v26, %v599_v9 }
 0x16e   : > { %694 = vrot.lane.b32.xlu1 %v641_v10, %s934_s13  ;;  %v640_v11 = vsel %vm560_vm10, %v448_v28, %v597_v8 }
 0x16f   : > { %692 = vrot.lane.b32.xlu0 %v640_v11, %s934_s13 }
 0x170   : > { %v615_v12 = vpop.permute.xlu1 %614 }
 0x171   : > { %v613_v13 = vpop.permute.xlu0 %612  ;;  %v649_v14 = vsel %vm569_vm11, %v457_v30, %v615_v12 }
 0x172   : > { %710 = vrot.lane.b32.xlu1 %v649_v14, %s934_s13  ;;  %v648_v15 = vsel %vm568_vm12, %v456_v32, %v613_v13 }
 0x173   : > { %708 = vrot.lane.b32.xlu0 %v648_v15, %s934_s13 }
 0x174   : > { %v603_v16 = vpop.permute.xlu1 %602 }
 0x175   : > { %v601_v17 = vpop.permute.xlu0 %600  ;;  %v643_v18 = vsel %vm563_vm13, %v451_v34, %v603_v16 }
 0x176   : > { %698 = vrot.lane.b32.xlu1 %v643_v18, %s934_s13  ;;  %v642_v19 = vsel %vm562_vm14, %v450_v36, %v601_v17 }
 0x177   : > { %696 = vrot.lane.b32.xlu0 %v642_v19, %s934_s13 }
 0x178   : > { %v619_v20 = vpop.permute.xlu1 %618 }
 0x179   : > { %v617_v21 = vpop.permute.xlu0 %616  ;;  %v651_v22 = vsel %vm571_vm15, %v459_v38, %v619_v20 }
 0x17a   : > { %714 = vrot.lane.b32.xlu1 %v651_v22, %s934_s13  ;;  %v650_v23 = vsel %vm570_vm0, %v458_v39, %v617_v21 }
 0x17b   : > { %712 = vrot.lane.b32.xlu0 %v650_v23, %s934_s13 }
 0x1d0   : > { %v687_v24 = vpop.permute.xlu1 %686 }
 0x1d1   : > { %734 = vst.msk [vmem:[%s990_s6 + $0x8] sm:$0xff] %vm732_vm1, %v687_v24  ;;  %v685_v25 = vpop.permute.xlu0 %684 }
 0x1d2   : > { %733 = vst.msk [vmem:[%s990_s6] sm:$0xff] %vm732_vm1, %v685_v25 }
 0x1d4   : > { %v703_v26 = vpop.permute.xlu1 %702 }
 0x1d5   : > { %742 = vst.msk [vmem:[%s990_s6 + $0x48] sm:$0xff] %vm732_vm1, %v703_v26  ;;  %v701_v27 = vpop.permute.xlu0 %700 }
 0x1d6   : > { %741 = vst.msk [vmem:[%s990_s6 + $0x40] sm:$0xff] %vm732_vm1, %v701_v27 }
 0x1d8   : > { %v691_v28 = vpop.permute.xlu1 %690 }
 0x1d9   : > { %736 = vst.msk [vmem:[%s990_s6 + $0x18] sm:$0xff] %vm732_vm1, %v691_v28  ;;  %v689_v29 = vpop.permute.xlu0 %688 }
 0x1da   : > { %735 = vst.msk [vmem:[%s990_s6 + $0x10] sm:$0xff] %vm732_vm1, %v689_v29 }
 0x1dc   : > { %v707_v30 = vpop.permute.xlu1 %706 }
 0x1dd   : > { %744 = vst.msk [vmem:[%s990_s6 + $0x58] sm:$0xff] %vm732_vm1, %v707_v30  ;;  %v705_v31 = vpop.permute.xlu0 %704 }
 0x1de   : > { %743 = vst.msk [vmem:[%s990_s6 + $0x50] sm:$0xff] %vm732_vm1, %v705_v31 }
 0x1e0   : > { %v695_v32 = vpop.permute.xlu1 %694 }
 0x1e1   : > { %738 = vst.msk [vmem:[%s990_s6 + $0x28] sm:$0xff] %vm732_vm1, %v695_v32  ;;  %v693_v33 = vpop.permute.xlu0 %692 }
 0x1e2   : > { %737 = vst.msk [vmem:[%s990_s6 + $0x20] sm:$0xff] %vm732_vm1, %v693_v33 }
 0x1e4   : > { %v711_v34 = vpop.permute.xlu1 %710 }
 0x1e5   : > { %746 = vst.msk [vmem:[%s990_s6 + $0x68] sm:$0xff] %vm732_vm1, %v711_v34  ;;  %v709_v35 = vpop.permute.xlu0 %708 }
 0x1e6   : > { %745 = vst.msk [vmem:[%s990_s6 + $0x60] sm:$0xff] %vm732_vm1, %v709_v35 }
 0x1e8   : > { %v699_v36 = vpop.permute.xlu1 %698 }
 0x1e9   : > { %740 = vst.msk [vmem:[%s990_s6 + $0x38] sm:$0xff] %vm732_vm1, %v699_v36  ;;  %v697_v37 = vpop.permute.xlu0 %696 }
 0x1ea   : > { %739 = vst.msk [vmem:[%s990_s6 + $0x30] sm:$0xff] %vm732_vm1, %v697_v37 }
 0x1ec   : > { %v715_v38 = vpop.permute.xlu1 %714 }
 0x1ed   : > { %748 = vst.msk [vmem:[%s990_s6 + $0x78] sm:$0xff] %vm732_vm1, %v715_v38  ;;  %v713_v39 = vpop.permute.xlu0 %712 }
 0x1ee   : > { %747 = vst.msk [vmem:[%s990_s6 + $0x70] sm:$0xff] %vm732_vm1, %v713_v39 }
 0x1ef PF: > { %s14_s15 = sadd.s32 1, %s930_s15  }
 0x1f0   : > { %p11_p4 = scmp.ge.s32.totalorder %s14_s15, 5  }
 0x1f2   :  { %13 = sbr.rel (!%p11_p4) target bundleno = 1 (0x1), region = 69 }

</bundles_post_ra>
